<compile_context>
chip_gen: v6e
topology: v6e:2x2x1
jax: 0.10.0
libtpu: 0.0.40
codegen_flags: <defaults>
</compile_context>

<pallas_src>
import functools

import jax
import jax.numpy as jnp
from jax import lax
from jax.experimental import pallas as pl
from jax.experimental.pallas import tpu as pltpu


def _roll_carry_kernel(qr_ref, xb_ref, x_hbm_ref, o_ref, carry_ref, sem,
                       *, nb_t, tb, tn):
    # qr_ref   : (2,) int32 SMEM scalars [q, r] with shift = q*TN + r, 0 <= r < TN
    # xb_ref   : (TB, TN) input block b(i) = (ti - q) mod NB   (pipelined by BlockSpec)
    # x_hbm_ref: full (B, T) input left in HBM (used only to prime the carry at ti == 0)
    # o_ref    : (TB, TN) output tile (bi, ti)
    # carry_ref: (TB, TN) VMEM scratch holding the previous step's b-tile == a(i)
    bi = pl.program_id(0)
    ti = pl.program_id(1)
    q = qr_ref[0]
    r = qr_ref[1]

    @pl.when(ti == 0)
    def _prime():
        # a(0) = (-q - 1) mod NB; fetch it once per batch-row with a manual DMA.
        a_blk = (nb_t - 1 - q) % nb_t
        cp = pltpu.make_async_copy(
            x_hbm_ref.at[pl.ds(bi * tb, tb), pl.ds(a_blk * tn, tn)],
            carry_ref, sem)
        cp.start()
        cp.wait()

    xb = xb_ref[...]
    # Select in the un-rotated domain, then a single XLU lane rotate:
    #   out[:, t] = x[:, (global_t - shift) mod T]
    #   first r lanes of the output tile come from the tail of block a (carry),
    #   the rest from block b.
    col = lax.broadcasted_iota(jnp.int32, (1, tn), 1)          # (1, TN), broadcasts
    merged = jnp.where(col >= (tn - r), carry_ref[...], xb)
    o_ref[...] = pltpu.roll(merged, r, axis=1)
    carry_ref[...] = xb                                        # becomes a(i+1)


def _sublane_pack(itemsize: int) -> int:
    # minimum sublane-dense batch block: 8 (f32), 16 (bf16), 32 (int8)
    return max(8, 32 // itemsize)


def _pick_batch_tile(B: int, itemsize: int) -> int:
    sub = _sublane_pack(itemsize)
    if B % sub != 0:
        return B                     # full-batch block (allowed: equals array dim)
    for tb in (4 * sub, 2 * sub, sub):
        if B % tb == 0:
            return tb
    return B


def _pick_time_tile(T: int, tb: int, itemsize: int, budget_bytes: int = 8 << 20):
    """Largest lane-dense TN (multiple of 128, divides T, NB >= 2) whose ~5-tile working
    set (2x in + 2x out double-buffers + carry) stays under the VMEM budget."""
    if T % 128 != 0:
        return None
    max_tn = min(T // 2, budget_bytes // (5 * tb * itemsize))
    best = None
    tn = 128
    while tn <= max_tn:
        if T % tn == 0:
            best = tn
        tn += 128
    return best


def time_shift_roll(signal, shift, *, small_input_bytes: int = 0):
    """Pallas equivalent of torch.roll(signal, shifts=shift, dims=1) for a (batch, time) signal."""
    # TODO(synk): only 2-D (batch, time) signals are supported; N-D inputs would need a
    # reshape/transpose wrapper so the rolled axis is the lane (last) dimension.
    assert signal.ndim == 2, "expected (batch, time) signal"
    B, T = signal.shape
    itemsize = jnp.dtype(signal.dtype).itemsize

    # Reduce the (possibly negative, traced) shift into [0, T); jnp '%' is floored mod.
    s = jnp.asarray(shift, dtype=jnp.int32) % jnp.int32(T)

    tb = _pick_batch_tile(B, itemsize)
    tn = _pick_time_tile(T, tb, itemsize)
    if tn is None or B * T * itemsize < small_input_bytes:
        # Untileable T, or (optionally) a tiny input where pallas_call launch overhead
        # dominates: XLA's roll is as fast and always correct.
        return jnp.roll(signal, s, axis=1)

    nb_b, nb_t = B // tb, T // tn
    q = s // jnp.int32(tn)
    r = s - q * jnp.int32(tn)
    qr = jnp.stack([q, r]).astype(jnp.int32)

    kernel = functools.partial(_roll_carry_kernel, nb_t=nb_t, tb=tb, tn=tn)

    def b_map(bi, ti, qr_ref):
        return (bi, (ti - qr_ref[0]) % nb_t)

    # 1x read + 1x write + one prime tile per batch-row.
    bytes_accessed = 2 * B * T * itemsize + B * tn * itemsize

    return pl.pallas_call(
        kernel,
        out_shape=jax.ShapeDtypeStruct((B, T), signal.dtype),
        grid_spec=pltpu.PrefetchScalarGridSpec(
            num_scalar_prefetch=1,
            grid=(nb_b, nb_t),
            in_specs=[
                pl.BlockSpec((tb, tn), b_map),
                pl.BlockSpec(memory_space=pl.ANY),   # raw HBM ref for the carry prime
            ],
            out_specs=pl.BlockSpec((tb, tn), lambda bi, ti, qr_ref: (bi, ti)),
            scratch_shapes=[
                pltpu.VMEM((tb, tn), signal.dtype),      # carried previous b-tile
                pltpu.SemaphoreType.DMA(()),             # prime-copy completion
            ],
        ),
        compiler_params=pltpu.CompilerParams(
            dimension_semantics=("parallel", "arbitrary"),
        ),
        cost_estimate=pl.CostEstimate(
            flops=0, transcendentals=0, bytes_accessed=int(bytes_accessed)),
    )(qr, signal, signal)


class TimeShiftRangePallas:
    """Mirror of the PyTorch TimeShiftRange module (shift stays a traced int32)."""

    def __init__(self, sample_rate, max_shift):
        self.sample_rate = sample_rate
        self.max_shift = max_shift

    def __call__(self, signal, key):
        # Deterministic replacement for np.random.uniform(-max_shift, max_shift).
        u = jax.random.uniform(key, (), minval=-self.max_shift, maxval=self.max_shift)
        # int() in the torch module truncates toward zero; astype(int32) does the same
        # but keeps the value on-device and jit-compatible (no host sync).
        shift = (u * self.sample_rate).astype(jnp.int32)
        return time_shift_roll(signal, shift), shift


if __name__ == "__main__":
    key = jax.random.PRNGKey(0)
    k_sig, k_shift = jax.random.split(key)

    B, T = 8, 1024
    sample_rate = 100
    max_shift = 2.0

    signal = jax.random.normal(k_sig, (B, T), dtype=jnp.float32)

    module = TimeShiftRangePallas(sample_rate, max_shift)
    run = jax.jit(module.__call__)          # whole forward works under jit
    out, shift = run(signal, k_shift)
    out = jax.block_until_ready(out)

    assert out.shape == signal.shape and out.dtype == signal.dtype
    shift_val = int(shift)                  # host read only for the reference check
    ref = jnp.roll(signal, shift_val, axis=1)
    assert bool(jnp.array_equal(out, ref)), f"mismatch at shift={shift_val}"

    # Edge-case shifts: zero, +/-1, tile boundaries, wrap-around (same shape -> one compile).
    roll_fn = jax.jit(time_shift_roll)
    for s_test in (0, 1, -1, 511, 512, -512, 1023, -1023, 1024, -1024, 1500, -1500):
        got = jax.block_until_ready(roll_fn(signal, jnp.int32(s_test)))
        exp = jnp.roll(signal, s_test, axis=1)
        assert bool(jnp.array_equal(got, exp)), f"mismatch at shift={s_test}"

    # Small-batch path (TB == B < 8, full-batch block) matching the original demo shape.
    sig_small = jax.random.normal(jax.random.PRNGKey(1), (4, 256), dtype=jnp.float32)
    got = jax.block_until_ready(jax.jit(time_shift_roll)(sig_small, jnp.int32(-37)))
    exp = jnp.roll(sig_small, -37, axis=1)
    assert bool(jnp.array_equal(got, exp)), "mismatch on small-batch path"

    print("KERNEL_OK")
</pallas_src>

<mosaic_0001>
module attributes {stable_mosaic.version = 11 : i64} {
  func.func @_roll_carry_kernel(%arg0: i32, %arg1: i32, %arg2: memref<2xi32, #tpu.memory_space<smem>>, %arg3: memref<8x512xf32, #tpu.memory_space<vmem>>, %arg4: memref<8x1024xf32, #tpu.memory_space<any>>, %arg5: memref<8x512xf32, #tpu.memory_space<vmem>>, %arg6: memref<8x512xf32, #tpu.memory_space<vmem>>, %arg7: memref<!tpu.dma_semaphore, #tpu.memory_space<semaphore_mem>>) attributes {dimension_semantics = [#tpu.dimension_semantics<parallel>, #tpu.dimension_semantics<arbitrary>], iteration_bounds = array<i64: 1, 2>, scalar_prefetch = 1 : i64, scratch_operands = 2 : i64, tpu.core_type = #tpu.core_type<tc>, window_params = [{transform_indices = @transform_0, window_bounds = array<i64: 8, 512>}, {}, {transform_indices = @transform_2, window_bounds = array<i64: 8, 512>}]} {
    %c0 = arith.constant 0 : index
    %0 = memref.load %arg2[%c0] : memref<2xi32, #tpu.memory_space<smem>>
    %c1 = arith.constant 1 : index
    %1 = memref.load %arg2[%c1] : memref<2xi32, #tpu.memory_space<smem>>
    %c0_i32 = arith.constant 0 : i32
    %2 = arith.cmpi eq, %arg1, %c0_i32 : i32
    %3 = arith.extui %2 : i1 to i32
    %c0_i32_0 = arith.constant 0 : i32
    %4 = arith.cmpi ne, %3, %c0_i32_0 : i32
    scf.if %4 {
      %c1_i32 = arith.constant 1 : i32
      %17 = arith.subi %c1_i32, %0 : i32
      %c2_i32 = arith.constant 2 : i32
      %c0_i32_9 = arith.constant 0 : i32
      %18 = arith.cmpi eq, %c2_i32, %c0_i32_9 : i32
      %c1_i32_10 = arith.constant 1 : i32
      %19 = arith.select %18, %c1_i32_10, %c2_i32 : i32
      %20 = arith.remsi %17, %19 : i32
      %c0_i32_11 = arith.constant 0 : i32
      %21 = arith.cmpi ne, %20, %c0_i32_11 : i32
      %c0_i32_12 = arith.constant 0 : i32
      %22 = arith.cmpi slt, %20, %c0_i32_12 : i32
      %c0_i32_13 = arith.constant 0 : i32
      %23 = arith.cmpi slt, %19, %c0_i32_13 : i32
      %24 = arith.xori %22, %23 : i1
      %25 = arith.andi %24, %21 : i1
      %26 = arith.addi %20, %19 : i32
      %27 = arith.select %25, %26, %20 : i32
      %c8_i32 = arith.constant 8 : i32
      %28 = arith.muli %arg0, %c8_i32 : i32
      %c512_i32_14 = arith.constant 512 : i32
      %29 = arith.muli %27, %c512_i32_14 : i32
      %30 = tpu.memref_slice %arg4[%28, %29] : memref<8x1024xf32, #tpu.memory_space<any>> -> memref<8x512xf32, #tpu.memory_space<any>>
      tpu.enqueue_dma source(%30 : memref<8x512xf32, #tpu.memory_space<any>>) target(%arg6 : memref<8x512xf32, #tpu.memory_space<vmem>>) target_semaphore(%arg7 : memref<!tpu.dma_semaphore, #tpu.memory_space<semaphore_mem>>)
      %31 = tpu.memref_slice %arg4[%28, %29] : memref<8x1024xf32, #tpu.memory_space<any>> -> memref<8x512xf32, #tpu.memory_space<any>>
      tpu.wait_dma2 semaphore(%arg7 : memref<!tpu.dma_semaphore, #tpu.memory_space<semaphore_mem>>) src(%31 : memref<8x512xf32, #tpu.memory_space<any>>) dst(%arg6 : memref<8x512xf32, #tpu.memory_space<vmem>>)
    } else {
    }
    %c0_1 = arith.constant 0 : index
    %c0_2 = arith.constant 0 : index
    %5 = vector.load %arg3[%c0_1, %c0_2] : memref<8x512xf32, #tpu.memory_space<vmem>>, vector<8x512xf32>
    %6 = tpu.iota {dimensions = array<i32: 1>} : vector<1x512xi32>
    %c512_i32 = arith.constant 512 : i32
    %7 = arith.subi %c512_i32, %1 : i32
    %8 = vector.broadcast %7 : i32 to vector<1x512xi32>
    %9 = arith.cmpi sge, %6, %8 : vector<1x512xi32>
    %c0_3 = arith.constant 0 : index
    %c0_4 = arith.constant 0 : index
    %10 = vector.load %arg6[%c0_3, %c0_4] : memref<8x512xf32, #tpu.memory_space<vmem>>, vector<8x512xf32>
    %11 = vector.shape_cast %9 : vector<1x512xi1> to vector<1x512xi1>
    %12 = vector.broadcast %11 : vector<1x512xi1> to vector<8x512xi1>
    %13 = arith.select %12, %10, %5 : vector<8x512xi1>, vector<8x512xf32>
    %14 = tpu.dynamic_rotate %13 by %1 dim 1 : vector<8x512xf32>, i32 -> vector<8x512xf32>
    %c0_5 = arith.constant 0 : index
    %c0_6 = arith.constant 0 : index
    %15 = vector.load %arg5[%c0_5, %c0_6] : memref<8x512xf32, #tpu.memory_space<vmem>>, vector<8x512xf32>
    tpu.vector_store %arg5[%c0_5, %c0_6], %14 {strides = array<i32>} : memref<8x512xf32, #tpu.memory_space<vmem>>, vector<8x512xf32>,
    %c0_7 = arith.constant 0 : index
    %c0_8 = arith.constant 0 : index
    %16 = vector.load %arg6[%c0_7, %c0_8] : memref<8x512xf32, #tpu.memory_space<vmem>>, vector<8x512xf32>
    tpu.vector_store %arg6[%c0_7, %c0_8], %5 {strides = array<i32>} : memref<8x512xf32, #tpu.memory_space<vmem>>, vector<8x512xf32>,
    return
  }
  func.func @transform_0(%arg0: i32, %arg1: i32, %arg2: memref<2xi32, #tpu.memory_space<smem>>) -> (i32, i32) {
    %c0 = arith.constant 0 : index
    %0 = memref.load %arg2[%c0] : memref<2xi32, #tpu.memory_space<smem>>
    %1 = arith.subi %arg1, %0 : i32
    %c2_i32 = arith.constant 2 : i32
    %c0_i32 = arith.constant 0 : i32
    %2 = arith.cmpi eq, %c2_i32, %c0_i32 : i32
    %c1_i32 = arith.constant 1 : i32
    %3 = arith.select %2, %c1_i32, %c2_i32 : i32
    %4 = arith.remsi %1, %3 : i32
    %c0_i32_0 = arith.constant 0 : i32
    %5 = arith.cmpi ne, %4, %c0_i32_0 : i32
    %c0_i32_1 = arith.constant 0 : i32
    %6 = arith.cmpi slt, %4, %c0_i32_1 : i32
    %c0_i32_2 = arith.constant 0 : i32
    %7 = arith.cmpi slt, %3, %c0_i32_2 : i32
    %8 = arith.xori %6, %7 : i1
    %9 = arith.andi %8, %5 : i1
    %10 = arith.addi %4, %3 : i32
    %11 = arith.select %9, %10, %4 : i32
    %c0_i32_3 = arith.constant 0 : i32
    return %arg0, %11 : i32, i32
  }
  func.func @transform_2(%arg0: i32, %arg1: i32, %arg2: memref<2xi32, #tpu.memory_space<smem>>) -> (i32, i32) {
    %c0_i32 = arith.constant 0 : i32
    return %arg0, %arg1 : i32, i32
  }
}

</mosaic_0001>

<bundles_post_ra>
// kernel: a_call__.1
= control target key start
LH: loop header
LB: loop body
LE: loop exit
PB: predicated region body
PF: predicated region fallthrough
CT: control target
= control target key end

     0   :  { %s872_s0 = inlined_call_operand.vmem [shape: s32[2], index: 0, kind: input, shape index: {}]   ;;  %s873_s1 = inlined_call_operand.vmem [shape: f32[8,1024], index: 1, kind: input, shape index: {}, may-alias: {1,2}]   ;;  %s874_s2 = inlined_call_operand.vmem [shape: f32[8,1024], index: 2, kind: input, shape index: {}, may-alias: {1,2}]   ;;  %s875_s3 = inlined_call_operand.hbm [shape: f32[8,1024], index: 3, kind: output, shape index: {}]  }
   0x1   :  { %s8_s14 = sshll.u32 %s872_s0, 4  ;;  %s9_s14 = int_to_ptr.vmem [resolvable:$true] %s8_s14 }
   0x2   :  { %s602_s15 = scalar_lea.vmem %s9_s14, 16  ;;  %p607_p1 = scmp.lt.s32.totalorder %s9_s14, %s9_s14 }
   0x3   :  { %p603_p0 = scmp.ne.s32.totalorder %s9_s14, %s602_s15  ;;  %p608_p2 = scmp.lt.s32.totalorder %s602_s15, %s602_s15 }
   0x5   :  { %p609_p3 = por %p608_p2, %p607_p1 }
   0x7   :  { %p610_p4 = pnand %p609_p3, %p603_p0 }
   0x9   :  { %613 = shalt.err (!%p610_p4)  }
   0xa   :  { %s696_s16 = smov [#allocation5]  }
   0xb   :  { %11 = dma.vmem_to_smem %s9_s14, 16, %s696_s16, [#allocation4] }
   0xc   :  { %664 = dma.done.wait [#allocation4], 16 }
   0xd   :  { %665 = vsyncadd [#allocation4], 4294967280 }
   0xe   :  { %13 = sfence }
   0xf   :  { %14 = vsyncpa [#allocation7], 0 }
  0x10   :  { %16 = vsyncpa [#allocation7 + $0x1], 0  ;;  %s721_s17 = smov 0   ;;  %s723_s18 = smov 0  }
  0x11   :  { %s725_s0 = smov 0   ;;  %s727_s19 = smov 0  }
  0x12   :  { %s729_s20 = smov 0   ;;  %s731_s21 = smov 0  }
  0x13 LB: > { %s515_s22 = sadd.s32 4294967295, %s694_s21   ;;  %s516_s23 = sadd.s32 4294967294, %s694_s21   ;;  %s694_s21 = sphi %s731_s21, %s22_s21   ;;  %s690_s20 = sphi %s729_s20, %s884_s20   ;;  %s686_s19 = sphi %s727_s19, %s883_s19   ;;  %s682_s0 = sphi %s725_s0, %s882_s0   ;;  %s678_s18 = sphi %s723_s18, %s881_s18   ;;  %s674_s17 = sphi %s721_s17, %s880_s17  }
  0x14   : > { %s31_s24 = sadd.s32 1, %s690_s20  ;;  %s99_s25 = sadd.s32 1, %s682_s0 }
  0x15   : > { %p32_p5 = scmp.ge.s32.totalorder %s31_s24, 2  ;;  %p109_p6 = scmp.ne.s32.totalorder %s682_s0, %s678_s18 }
  0x16   : > { %p110_p7 = scmp.eq.s32.totalorder %s515_s22, 1  ;;  %p115_p8 = scmp.ne.s32.totalorder %s678_s18, %s674_s17 }
  0x17   : > { %s886_s24 = smov (%p32_p5, %s31_s24), 0  ;;  %p116_p10 = scmp.eq.s32.totalorder %s516_s23, 1 }
  0x18   : > { %p761_p9 = por %p110_p7, %p109_p6  ;;  %s95_s27 = ssub.s32 %s690_s20, %s886_s24 }
  0x19   : > { %p525_p11 = scmp.ge.s32.totalorder %s694_s21, 1  ;;  %p97_p12 = scmp.eq.s32.totalorder %s95_s27, 0 }
  0x1a   : > { %p768_p13 = por %p116_p10, %p115_p8  ;;  %p175_p0 = scmp.lt.s32.totalorder %s694_s21, 3 }
  0x1b   : > { %s774_s29 = scalar_select %p97_p12, %s682_s0, %s99_s25  }
  0x1c   : > { %p176_p1 = pnand %p525_p11, %p175_p0 }
  0x1d   : > { %s210_s30 = sand.u32 (!%p176_p1), 1, %s678_s18   ;;  %s213_s4 = sld [smem:[#allocation5]] (!%p176_p1) }
  0x1e   : > { %179 = sbr.rel (%p176_p1) target bundleno = 208 (0xd0), region = 24  ;;  %s526_s5 = sshll.u32 (!%p176_p1), %s210_s30, 5 }
  0x1f   : > { %s779_s6 = sld [smem:[#allocation5 + $0x1]] (!%p176_p1)  ;;  %s787_s23 = scalar_lea.vmem (!%p176_p1), [#allocation6], %s526_s5 }
  0x20   : > { %p533_p5 = scmp.ne.s32.totalorder (!%p176_p1), %s686_s19, 0 }
  0x23   : > { %s214_s7 = ssub.s32 %s686_s19, %s213_s4  ;;  %s258_s25 = ssub.s32 (!%p533_p5), 1, %s213_s4 }
  0x24   : > { %p215_p2 = scmp.lt.s32.totalorder %s214_s7, 0  ;;  %s216_s8 = ssub.s32 0, %s214_s7 }
  0x25   : > { %s527_s9 = smin.u32 %s216_s8, %s214_s7  ;;  %p259_p6 = scmp.lt.s32.totalorder (!%p533_p5), %s258_s25, 0 }
  0x26   : > { %s218_s10 = sand.u32 1, %s527_s9   ;;  %s260_s27 = ssub.s32 (!%p533_p5), 0, %s258_s25 }
  0x27   : > { %s219_s11 = ssub.s32 0, %s218_s10  ;;  %s534_s7 = smin.u32 (!%p533_p5), %s260_s27, %s258_s25 }
  0x28   : > { %s888_s11 = smov (!%p215_p2, %s219_s11), %s218_s10  ;;  %s262_s8 = sand.u32 (!%p533_p5), 1, %s534_s7  }
  0x29   : > { %p529_p3 = scmp.lt.s32.totalorder %s888_s11, 0  ;;  %s225_s12 = sadd.s32 2, %s888_s11 }
  0x2a   : > { %s263_s9 = ssub.s32 (!%p533_p5), 0, %s262_s8 }
  0x2b   : > { %s890_s12 = smov (!%p529_p3, %s225_s12), %s888_s11 }
  0x2c   : > { %s530_s13 = sshll.u32 %s890_s12, 2 }
  0x2d   : > { %p230_p4 = scmp.lt.s32.totalorder %s530_s13, 7  ;;  %257 = sbr.rel (%p533_p5) target bundleno = 64 (0x40), region = 28 }
  0x2f   : > { %s892_s13 = smov (!%p230_p4, %s530_s13), 7 }
  0x30   : > { %s531_s14 = sshll.u32 %s892_s13, 3 }
  0x31   : > { %s785_s22 = scalar_lea.vmem %s873_s1, %s531_s14 }
  0x32   : > { %s894_s9 = smov (!%p259_p6, %s263_s9), %s262_s8 }
  0x33   : > { %p536_p7 = scmp.lt.s32.totalorder %s894_s9, 0  ;;  %s269_s10 = sadd.s32 2, %s894_s9 }
  0x35   : > { %s896_s10 = smov (!%p536_p7, %s269_s10), %s894_s9 }
  0x36   : > { %s537_s11 = sshll.u32 %s896_s10, 9 }
  0x37   : > { %s273_s12 = sshra.s32 %s537_s11, 7 }
  0x38   : > { %s538_s13 = sshll.u32 %s273_s12, 3 }
  0x39   : > { %s280_s5 = scalar_lea.vmem %s874_s2, %s538_s13 }
  0x3a   : > { %v314_v0 = vld [vmem:[%s280_s5] sm:$0xff]  ;;  %v316_v1 = vld [vmem:[%s280_s5 + $0x8] sm:$0xff]  ;;  %v318_v2 = vld [vmem:[%s280_s5 + $0x10] sm:$0xff] }
  0x3b   : > { %315 = vst [vmem:[#allocation2 + $0x10] sm:$0xff] %v314_v0  ;;  %317 = vst [vmem:[#allocation2] sm:$0xff] %v316_v1  ;;  %v320_v3 = vld [vmem:[%s280_s5 + $0x18] sm:$0xff] }
  0x3c   : > { %319 = vst [vmem:[#allocation2 + $0x18] sm:$0xff] %v318_v2  ;;  %321 = vst [vmem:[#allocation2 + $0x8] sm:$0xff] %v320_v3 }
  0x3d   : > { %329 = vsyncadd [#allocation3], 512 }
  0x3e   : > { %666 = dma.done.wait [#allocation3], 512 }
  0x3f   : > { %667 = vsyncadd [#allocation3], 4294966784 }
  0x40 PF: > { %v334_v4 = vld [vmem:[%s785_s22] sm:$0xff]  ;;  %v338_v5 = vlaneseq  ;;  %s343_s4 = ssub.s32 512, %s779_s6  ;;  %s365_s16 = sand.u32 511, %s779_s6   ;;  %v336_v7 = vld [vmem:[%s785_s22 + $0x10] sm:$0xff]  ;;  %v335_v10 = vld [vmem:[%s785_s22 + $0x8] sm:$0xff] }
  0x41   : > { %v344_v8 = vstv %s343_s4  ;;  %s366_s25 = sand.u32 127, %s365_s16   ;;  %v337_v13 = vld [vmem:[%s785_s22 + $0x18] sm:$0xff]  ;;  %s367_s22 = sshrl.u32 %s365_s16, 7 }
  0x42   : > { %v349_v6 = vld [vmem:[#allocation2 + $0x10] sm:$0xff]  ;;  %v350_v11 = vld [vmem:[#allocation2] sm:$0xff]  ;;  %v339_v12 = vand.u32 127, %v338_v5  ;;  %v376_v15 = vstv %s366_s25  ;;  %s382_s27 = sand.u32 1, %s367_s22  ;;  %s389_s7 = sand.u32 2, %s367_s22 }
  0x43   : > { %400 = vst [vmem:[#allocation2 + $0x10] sm:$0xff] %v334_v4  ;;  %v351_v9 = vld [vmem:[#allocation2 + $0x18] sm:$0xff]  ;;  %401 = vst [vmem:[#allocation2] sm:$0xff] %v335_v10  ;;  %v352_v14 = vld [vmem:[#allocation2 + $0x8] sm:$0xff]  ;;  %v383_v25 = vstv %s382_s27  ;;  %v390_v27 = vstv %s389_s7  ;;  %s545_s8 = sshll.u32 %s686_s19, 9  ;;  %s421_s9 = sshll.u32 %s787_s23, 4  ;;  %s822_s9 = int_to_ptr.vmem [resolvable:$true] %s421_s9 }
  0x44   : > { %402 = vst [vmem:[#allocation2 + $0x18] sm:$0xff] %v336_v7  ;;  %403 = vst [vmem:[#allocation2 + $0x8] sm:$0xff] %v337_v13  ;;  %vm345_vm0 = vcmp.ge.s32.totalorder %v339_v12, %v344_v8  ;;  %v341_v16 = vadd.s32 256, %v339_v12  ;;  %v340_v17 = vadd.s32 128, %v339_v12  ;;  %v342_v19 = vadd.s32 384, %v339_v12  ;;  %s820_s10 = scalar_lea.hbm %s875_s3, %s545_s8  ;;  %s405_s11 = scalar_lea.sflag [#allocation7], %s210_s30 }
  0x45   : > { %v361_v18 = vsel %vm345_vm0, %v349_v6, %v334_v4  ;;  %vm801_vm1 = vcmp.lt.s32.totalorder %v339_v12, %v376_v15  ;;  %vm384_vm5 = vcmp.ne.s32.totalorder %v383_v25, 0  ;;  %vm391_vm6 = vcmp.ne.s32.totalorder %v390_v27, 0  ;;  %s614_s12 = scalar_lea.vmem %s822_s9, 512  ;;  %s697_s13 = smov [#allocation6]  }
  0x46   : > { %368 = vrot.lane.b32.xlu0 %v361_v18, %s366_s25  ;;  %vm347_vm2 = vcmp.ge.s32.totalorder %v341_v16, %v344_v8  ;;  %vm346_vm3 = vcmp.ge.s32.totalorder %v340_v17, %v344_v8  ;;  %vm348_vm4 = vcmp.ge.s32.totalorder %v342_v19, %v344_v8  ;;  %p615_p8 = scmp.ne.s32.totalorder %s822_s9, %s614_s12  ;;  %s618_s14 = sshll.u32 %s697_s13, 4  ;;  %s619_s14 = int_to_ptr.vmem [resolvable:$false] %s618_s14 }
  0x47   : > { %v363_v21 = vsel %vm347_vm2, %v351_v9, %v336_v7  ;;  %v362_v22 = vsel %vm346_vm3, %v350_v11, %v335_v10  ;;  %v364_v23 = vsel %vm348_vm4, %v352_v14, %v337_v13  ;;  %s620_s15 = scalar_lea.vmem %s619_s14, 1024  ;;  %p621_p12 = scmp.lt.s32.totalorder %s822_s9, %s619_s14 }
  0x48   : > { %372 = vrot.lane.b32.xlu1 %v363_v21, %s366_s25  ;;  %p616_p10 = pnand %p615_p8, %p761_p9  ;;  %p622_p0 = scmp.lt.s32.totalorder %s620_s15, %s614_s12 }
  0x4a   : > { %370 = vrot.lane.b32.xlu0 %v362_v22, %s366_s25  ;;  %p617_p11 = pneg %p616_p10  ;;  %p623_p1 = por %p622_p0, %p621_p12 }
  0x4c   : > { %374 = vrot.lane.b32.xlu1 %v364_v23, %s366_s25  ;;  %p624_p2 = pnand %p623_p1, %p617_p11 }
  0xb8   : > { %v369_v24 = vpop.permute.xlu0 %368 }
  0xba   : > { %v373_v26 = vpop.permute.xlu1 %372 }
  0xbc   : > { %v371_v28 = vpop.permute.xlu0 %370 }
  0xbd   : > { %v379_v29 = vsel %vm801_vm1, %v371_v28, %v373_v26  ;;  %v380_v30 = vsel %vm801_vm1, %v369_v24, %v371_v28 }
  0xbe   : > { %v387_v31 = vsel %vm384_vm5, %v380_v30, %v379_v29  ;;  %v375_v32 = vpop.permute.xlu1 %374 }
  0xbf   : > { %v378_v33 = vsel %vm801_vm1, %v373_v26, %v375_v32  ;;  %v381_v34 = vsel %vm801_vm1, %v375_v32, %v369_v24 }
  0xc0   : > { %v385_v35 = vsel %vm384_vm5, %v378_v33, %v381_v34  ;;  %v386_v36 = vsel %vm384_vm5, %v381_v34, %v380_v30  ;;  %v388_v37 = vsel %vm384_vm5, %v379_v29, %v378_v33 }
  0xc1   : > { %v392_v38 = vsel %vm391_vm6, %v387_v31, %v385_v35  ;;  %v393_v39 = vsel %vm391_vm6, %v388_v37, %v386_v36  ;;  %v394_v40 = vsel %vm391_vm6, %v385_v35, %v387_v31  ;;  %v395_v41 = vsel %vm391_vm6, %v386_v36, %v388_v37 }
  0xc2   : > { %396 = vst [vmem:[%s787_s23] sm:$0xff] %v392_v38  ;;  %397 = vst [vmem:[%s787_s23 + $0x8] sm:$0xff] %v393_v39 }
  0xc3   : > { %398 = vst [vmem:[%s787_s23 + $0x10] sm:$0xff] %v394_v40  ;;  %399 = vst [vmem:[%s787_s23 + $0x18] sm:$0xff] %v395_v41 }
  0xc4   : > { %627 = shalt.err (!%p624_p2)
}
  0xc5   : > { %s628_s23 = scalar_lea.hbm %s820_s10, 512  ;;  %s632_s4 = scalar_lea.hbm %s875_s3, 1024 }
  0xc6   : > { %p629_p3 = scmp.ne.s32.totalorder %s820_s10, %s628_s23  ;;  %p633_p6 = scmp.lt.s32.totalorder %s820_s10, %s875_s3 }
  0xc7   : > { %p634_p7 = scmp.lt.s32.totalorder %s632_s4, %s628_s23 }
  0xc8   : > { %p630_p4 = pnand %p629_p3, %p761_p9 }
  0xc9   : > { %p635_p8 = por %p634_p7, %p633_p6 }
  0xca   : > { %p631_p5 = pneg %p630_p4 }
  0xcc   : > { %p636_p10 = pnand %p635_p8, %p631_p5 }
  0xce   : > { %639 = shalt.err (!%p636_p10)
}
  0xcf   : > { %546 = dma.vmem_to_hbm [thread:$0]  (%p761_p9), %s822_s9, 512, %s820_s10, %s405_s11  }
  0xd0 PF: > { %p552_p11 = scmp.ge.s32.totalorder %s694_s21, 2  ;;  %s433_s22 = sand.u32 1, %s674_s17  }
  0xd1   : > { %s434_s27 = scalar_lea.sflag [#allocation7], %s433_s22 }
  0xd2   : > { %p549_p12 = pnand %p552_p11, %p768_p13 }
  0xd4   : > { %p550_p0 = pneg %p549_p12 }
  0xd6   : > { %669 = dma.done.wait (%p550_p0), %s434_s27, 512  }
  0xd7   : > { %671 = vsyncadd (%p550_p0), %s434_s27, 4294966784  ;;  %s22_s21 = sadd.s32 1, %s694_s21   ;;  %s880_s17 = smov %s678_s18 }
  0xd8   : > { %p19_p1 = scmp.ge.s32.totalorder %s22_s21, 4   ;;  %s881_s18 = smov %s682_s0 }
  0xd9   : > { %s882_s0 = smov %s774_s29  ;;  %s883_s19 = smov %s690_s20 }
  0xda   : > { %s884_s20 = smov %s886_s24  ;;  %21 = sbr.rel (!%p19_p1) target bundleno = 19 (0x13), region = 106 }
  0xdf   :  { %439 = vsyncpa [#allocation7], 1 }
  0xe0   :  { %441 = vsyncpa [#allocation7 + $0x1], 1 }
  0xe1   :  { %442 = vsyncmov [#allocation3] }
  0xe4   :  { %s443_s26 = vpop.sfrf %442 }
  0xe5   :  { %p544_p9 = scmp.ne.s32.totalorder %s443_s26, 0 }
  0xe7   :  { %447 = shalt.err (%p544_p9)  }

</bundles_post_ra>
